<compile_context>
chip_gen: v7x
topology: tpu7x:2x2x1
jax: 0.10.0
libtpu: 0.0.40
codegen_flags: <defaults>
</compile_context>

<pallas_src>
import jax
import jax.numpy as jnp
from jax.experimental import pallas as pl
from jax.experimental.pallas import tpu as pltpu


def _round_up(x, m):
    return ((x + m - 1) // m) * m


def _decorrelation_kernel(x_ref, w_ref, b_ref, o_ref):
    # x_ref: (TB, C) tile; w_ref, b_ref: (1, C) params (constant block).
    x = x_ref[...].astype(jnp.float32)
    c = x.shape[1]

    # One-pass stats: the two lane (XLU) reductions are independent.
    s1 = jnp.sum(x, axis=1, keepdims=True)
    s2 = jnp.sum(x * x, axis=1, keepdims=True)
    mean = s1 * jnp.float32(1.0 / c)
    # torch.std default is unbiased: divide by (C - 1).
    var = (s2 - mean * s1) * jnp.float32(1.0 / (c - 1))
    var = jnp.maximum(var, 0.0)  # guard tiny negatives from cancellation
    std = jnp.sqrt(var)

    # EUP approximate reciprocal (own VLIW slot) instead of a full f32 divide.
    inv_std = pl.reciprocal(std + jnp.float32(1e-5), approx=True)

    # Hoisted, single f32 cast of the (1, C) params.
    w = w_ref[...].astype(jnp.float32)
    b = b_ref[...].astype(jnp.float32)

    y = (x - mean) * inv_std * w + b
    # sigmoid(y) = 0.5 * (tanh(0.5 * y) + 1): one EUP tanh + one FMA.
    sig = 0.5 * (jnp.tanh(0.5 * y) + 1.0)

    o_ref[...] = (x * sig).astype(o_ref.dtype)


def _num_tensorcores_per_device():
    """Best-effort count of TensorCores sharing one Pallas grid on this chip."""
    try:
        kind = jax.devices()[0].device_kind.lower()
    except Exception:
        return 1
    # v4 / v5p (megacore) and v7x expose 2 TensorCores per device.
    if any(tag in kind for tag in ("v4", "v5p", "v7", "7x")):
        return 2
    return 1


def _vmem_row_cap(c, itemsize):
    """Max rows/tile so double-buffered in/out tiles + f32 temps fit ~24 MiB
    (v7x has only 64 MiB of physical VMEM per TensorCore)."""
    budget = 24 << 20
    per_row = max(1, c * (2 * 2 * itemsize + 3 * 4))
    return max(8, (budget // per_row) // 8 * 8)


def _choose_tile_batch(n, c, itemsize, num_tc):
    """~4 MiB input tiles; no forced step count on single-TC chips; >= num_tc
    roughly balanced blocks on dual-TC chips so 'parallel' sharding kicks in."""
    row_bytes = max(1, c * itemsize)
    target_bytes = 4 << 20
    tb = max(8, ((target_bytes // row_bytes) // 8) * 8)
    n8 = _round_up(n, 8)
    tb = min(tb, n8)  # never bigger than the (rounded) batch
    if num_tc > 1 and n8 > 8:
        blocks = max(num_tc, pl.cdiv(n8, tb))
        if blocks % num_tc:
            blocks += num_tc - (blocks % num_tc)
        tb = max(8, _round_up(pl.cdiv(n8, blocks), 8))
    return min(tb, _vmem_row_cap(c, itemsize))


def decorrelation(gap, weight, bias, *, tile_batch=None):
    """gap: (N, C); weight, bias: (1, C). Returns (N, C), same dtype as gap."""
    n, c = gap.shape
    itemsize = jnp.dtype(gap.dtype).itemsize
    param_itemsize = jnp.dtype(weight.dtype).itemsize
    num_tc = _num_tensorcores_per_device()

    if tile_batch is None:
        tile_batch = _choose_tile_batch(n, c, itemsize, num_tc)
    else:
        tile_batch = max(8, _round_up(int(tile_batch), 8))
        tile_batch = min(tile_batch, _round_up(n, 8), _vmem_row_cap(c, itemsize))

    grid = (pl.cdiv(n, tile_batch),)

    # in + out tiles, double-buffered, plus headroom for f32 intermediates.
    buf_bytes = 2 * 2 * tile_batch * c * itemsize
    vmem_limit = int(min(max(4 * buf_bytes, 8 << 20), 32 << 20))

    # Advisory cost: true traffic (input + output + params), one tanh/element.
    cost = pl.CostEstimate(
        flops=10 * n * c,
        transcendentals=n * c,
        bytes_accessed=2 * n * c * itemsize + 2 * c * param_itemsize,
    )

    return pl.pallas_call(
        _decorrelation_kernel,
        out_shape=jax.ShapeDtypeStruct((n, c), gap.dtype),
        grid_spec=pltpu.PrefetchScalarGridSpec(
            num_scalar_prefetch=0,
            grid=grid,
            in_specs=[
                pl.BlockSpec((tile_batch, c), lambda i: (i, 0)),  # gap tile
                pl.BlockSpec((1, c), lambda i: (0, 0)),           # weight
                pl.BlockSpec((1, c), lambda i: (0, 0)),           # bias
            ],
            out_specs=pl.BlockSpec((tile_batch, c), lambda i: (i, 0)),
        ),
        compiler_params=pltpu.CompilerParams(
            dimension_semantics=("parallel",),
            vmem_limit_bytes=vmem_limit,
        ),
        cost_estimate=cost,
    )(gap, weight, bias)


def decorrelation_ref(gap, weight, bias):
    mean = jnp.mean(gap, axis=1, keepdims=True)
    std = jnp.std(gap, axis=1, keepdims=True, ddof=1)  # unbiased, like torch.std
    y = (gap - mean) / (std + 1e-5)
    y = y * weight + bias
    y = jax.nn.sigmoid(y)
    return gap * y


if __name__ == "__main__":
    key = jax.random.PRNGKey(0)
    k1, k2, k3 = jax.random.split(key, 3)

    # Config 1: aligned shapes, module-default params (ones / zeros).
    N, C = 16, 128
    gap = jax.random.normal(k1, (N, C), dtype=jnp.float32)
    weight = jnp.ones((1, C), dtype=jnp.float32)
    bias = jnp.zeros((1, C), dtype=jnp.float32)

    out = jax.block_until_ready(decorrelation(gap, weight, bias))
    ref = decorrelation_ref(gap, weight, bias)
    assert out.shape == gap.shape and out.dtype == gap.dtype
    assert jnp.allclose(out, ref, atol=5e-3, rtol=5e-3), "mismatch vs reference (cfg 1)"

    # Config 2: unaligned N and C + non-trivial affine.
    # Exercises the partial tail row-block and the non-multiple-of-128 last dim
    # (no wrapper padding / slicing anymore).
    N2, C2 = 6, 96
    gap2 = jax.random.normal(k2, (N2, C2), dtype=jnp.float32)
    w2 = 1.0 + 0.1 * jax.random.normal(k3, (1, C2), dtype=jnp.float32)
    b2 = 0.05 * jnp.ones((1, C2), dtype=jnp.float32)

    out2 = jax.block_until_ready(decorrelation(gap2, w2, b2))
    ref2 = decorrelation_ref(gap2, w2, b2)
    assert out2.shape == gap2.shape and out2.dtype == gap2.dtype
    assert jnp.allclose(out2, ref2, atol=5e-3, rtol=5e-3), "mismatch vs reference (cfg 2)"

    print("KERNEL_OK")
</pallas_src>

<mosaic_0001>
module attributes {stable_mosaic.version = 11 : i64} {
  func.func @_decorrelation_kernel(%arg0: i32, %arg1: memref<16x128xf32, #tpu.memory_space<vmem>>, %arg2: memref<1x128xf32, #tpu.memory_space<vmem>>, %arg3: memref<1x128xf32, #tpu.memory_space<vmem>>, %arg4: memref<16x128xf32, #tpu.memory_space<vmem>>) attributes {dimension_semantics = [#tpu.dimension_semantics<parallel>], iteration_bounds = array<i64: 1>, scalar_prefetch = 0 : i64, scratch_operands = 0 : i64, tpu.core_type = #tpu.core_type<tc>, window_params = [{transform_indices = @transform_0, window_bounds = array<i64: 16, 128>}, {pipeline_mode = #tpu.pipeline_mode<synchronous>, transform_indices = @transform_1, window_bounds = array<i64: 1, 128>}, {pipeline_mode = #tpu.pipeline_mode<synchronous>, transform_indices = @transform_2, window_bounds = array<i64: 1, 128>}, {transform_indices = @transform_3, window_bounds = array<i64: 16, 128>}]} {
    %c0 = arith.constant 0 : index
    %c0_0 = arith.constant 0 : index
    %0 = vector.load %arg1[%c0, %c0_0] : memref<16x128xf32, #tpu.memory_space<vmem>>, vector<16x128xf32>
    %cst = arith.constant dense<0.000000e+00> : vector<16xf32>
    %1 = vector.multi_reduction <add>, %0, %cst [1] : vector<16x128xf32> to vector<16xf32>
    %2 = vector.shape_cast %1 : vector<16xf32> to vector<16x1xf32>
    %3 = arith.mulf %0, %0 : vector<16x128xf32>
    %cst_1 = arith.constant dense<0.000000e+00> : vector<16xf32>
    %4 = vector.multi_reduction <add>, %3, %cst_1 [1] : vector<16x128xf32> to vector<16xf32>
    %5 = vector.shape_cast %4 : vector<16xf32> to vector<16x1xf32>
    %cst_2 = arith.constant 7.812500e-03 : f32
    %6 = vector.broadcast %cst_2 : f32 to vector<16x1xf32>
    %7 = arith.mulf %2, %6 : vector<16x1xf32>
    %8 = arith.mulf %7, %2 : vector<16x1xf32>
    %9 = arith.subf %5, %8 : vector<16x1xf32>
    %cst_3 = arith.constant 0.00787401571 : f32
    %10 = vector.broadcast %cst_3 : f32 to vector<16x1xf32>
    %11 = arith.mulf %9, %10 : vector<16x1xf32>
    %cst_4 = arith.constant 0.000000e+00 : f32
    %12 = vector.broadcast %cst_4 : f32 to vector<16x1xf32>
    %13 = arith.maximumf %11, %12 : vector<16x1xf32>
    %14 = math.sqrt %13 : vector<16x1xf32>
    %cst_5 = arith.constant 9.99999974E-6 : f32
    %15 = vector.broadcast %cst_5 : f32 to vector<16x1xf32>
    %16 = arith.addf %14, %15 : vector<16x1xf32>
    %17 = tpu.reciprocal %16 {approx = true} : vector<16x1xf32> -> vector<16x1xf32>
    %c0_6 = arith.constant 0 : index
    %c0_7 = arith.constant 0 : index
    %18 = vector.load %arg2[%c0_6, %c0_7] : memref<1x128xf32, #tpu.memory_space<vmem>>, vector<1x128xf32>
    %c0_8 = arith.constant 0 : index
    %c0_9 = arith.constant 0 : index
    %19 = vector.load %arg3[%c0_8, %c0_9] : memref<1x128xf32, #tpu.memory_space<vmem>>, vector<1x128xf32>
    %20 = vector.broadcast %7 : vector<16x1xf32> to vector<16x128xf32>
    %21 = arith.subf %0, %20 : vector<16x128xf32>
    %22 = vector.broadcast %17 : vector<16x1xf32> to vector<16x128xf32>
    %23 = arith.mulf %21, %22 : vector<16x128xf32>
    %24 = vector.broadcast %18 : vector<1x128xf32> to vector<16x128xf32>
    %25 = arith.mulf %23, %24 : vector<16x128xf32>
    %26 = vector.broadcast %19 : vector<1x128xf32> to vector<16x128xf32>
    %27 = arith.addf %25, %26 : vector<16x128xf32>
    %cst_10 = arith.constant 5.000000e-01 : f32
    %28 = vector.broadcast %cst_10 : f32 to vector<16x128xf32>
    %29 = arith.mulf %28, %27 : vector<16x128xf32>
    %30 = math.tanh %29 : vector<16x128xf32>
    %cst_11 = arith.constant 1.000000e+00 : f32
    %31 = vector.broadcast %cst_11 : f32 to vector<16x128xf32>
    %32 = arith.addf %30, %31 : vector<16x128xf32>
    %cst_12 = arith.constant 5.000000e-01 : f32
    %33 = vector.broadcast %cst_12 : f32 to vector<16x128xf32>
    %34 = arith.mulf %33, %32 : vector<16x128xf32>
    %35 = arith.mulf %0, %34 : vector<16x128xf32>
    %c0_13 = arith.constant 0 : index
    %c0_14 = arith.constant 0 : index
    %36 = vector.load %arg4[%c0_13, %c0_14] : memref<16x128xf32, #tpu.memory_space<vmem>>, vector<16x128xf32>
    tpu.vector_store %arg4[%c0_13, %c0_14], %35 {strides = array<i32>} : memref<16x128xf32, #tpu.memory_space<vmem>>, vector<16x128xf32>,
    return
  }
  func.func @transform_0(%arg0: i32) -> (i32, i32) {
    %c0_i32 = arith.constant 0 : i32
    %c0_i32_0 = arith.constant 0 : i32
    return %arg0, %c0_i32 : i32, i32
  }
  func.func @transform_1(%arg0: i32) -> (i32, i32) {
    %c0_i32 = arith.constant 0 : i32
    %c0_i32_0 = arith.constant 0 : i32
    %c0_i32_1 = arith.constant 0 : i32
    return %c0_i32, %c0_i32_0 : i32, i32
  }
  func.func @transform_2(%arg0: i32) -> (i32, i32) {
    %c0_i32 = arith.constant 0 : i32
    %c0_i32_0 = arith.constant 0 : i32
    %c0_i32_1 = arith.constant 0 : i32
    return %c0_i32, %c0_i32_0 : i32, i32
  }
  func.func @transform_3(%arg0: i32) -> (i32, i32) {
    %c0_i32 = arith.constant 0 : i32
    %c0_i32_0 = arith.constant 0 : i32
    return %arg0, %c0_i32 : i32, i32
  }
}

</mosaic_0001>

<bundles_post_ra>
// kernel: tpu_custom_call.1
= control target key start
LH: loop header
LB: loop body
LE: loop exit
PB: predicated region body
PF: predicated region fallthrough
CT: control target
= control target key end

     0   :  { %8 = vsyncpa [#allocation3], 0  ;;  %s253_s0 = inlined_call_operand.hbm [shape: f32[16,128], index: 0, kind: input, shape index: {}]   ;;  %s254_s1 = inlined_call_operand.vmem [shape: f32[1,128], index: 1, kind: input, shape index: {}]   ;;  %s255_s2 = inlined_call_operand.vmem [shape: f32[1,128], index: 2, kind: input, shape index: {}]   ;;  %s256_s3 = inlined_call_operand.hbm [shape: f32[16,128], index: 3, kind: output, shape index: {}]  }
   0x1   :  { %9 = vsyncpa [#allocation4], 0  ;;  %s186_s12 = smov [#allocation2]   ;;  %s138_s16 = scalar_lea.hbm %s253_s0, 256 }
   0x2   :  { %s15_s13 = sshll.u32 %s186_s12, 4  ;;  %p139_p0 = scmp.ne.s32.totalorder %s253_s0, %s138_s16  ;;  %s16_s13 = int_to_ptr.vmem [resolvable:$true] %s15_s13 }
   0x3   :  { %p142_p1 = scmp.lt.u32.totalorder %s138_s16, %s253_s0 }
   0x5   :  { %p144_p2 = pnand %p142_p1, %p139_p0 }
   0x7   :  { %147 = shalt.err (!%p144_p2)
}
   0x8   :  { %s148_s21 = scalar_lea.vmem %s16_s13, 256  ;;  %p153_p4 = scmp.lt.s32.totalorder %s16_s13, %s16_s13 }
   0x9   :  { %p149_p3 = scmp.ne.s32.totalorder %s16_s13, %s148_s21  ;;  %p154_p5 = scmp.lt.s32.totalorder %s148_s21, %s148_s21 }
   0xb   :  { %p155_p6 = por %p154_p5, %p153_p4 }
   0xd   :  { %p156_p7 = pnand %p155_p6, %p149_p3 }
   0xf   :  { %159 = shalt.err (!%p156_p7)
}
  0x10   :  { %s187_s22 = smov 128   ;;  %s188_s23 = smov 8  }
  0x11   :  { %21 = dma.hbm_to_vmem [thread:$0]  %s253_s0, 256, %s16_s13, [#allocation3], %s187_s22, %s187_s22, %s188_s23  }
  0x12   :  { %182 = dma.done.wait [#allocation3], 256  }
  0x13   :  { %183 = vsyncadd [#allocation3], 4294967040  ;;  %v29_v0 = vld [vmem:[#allocation2] sm:$0xff]  ;;  %v225_v2 = vld [vmem:[#allocation2 + $0x8] sm:$0xff] }
  0x14   :  { %31 = vadd.xlane.f32.xlu0 %v29_v0  ;;  %v35_v1 = vmul.f32 %v29_v0, %v29_v0  ;;  %v36_v3 = vmul.f32 %v225_v2, %v225_v2  ;;  %v120_v32 = vld [vmem:[%s254_s1] ss:$0 sm:$0xff]  ;;  %s189_s1 = smov [#allocation5]  }
  0x15   :  { %v121_v34 = vld [vmem:[%s255_s2] ss:$0 sm:$0xff]  ;;  %s108_s2 = sshll.u32 %s189_s1, 4  ;;  %s109_s2 = int_to_ptr.vmem [resolvable:$true] %s108_s2 }
  0x16   :  { %37 = vadd.xlane.f32.xlu1 %v35_v1  ;;  %s160_s29 = scalar_lea.vmem %s109_s2, 256  ;;  %p165_p9 = scmp.lt.s32.totalorder %s109_s2, %s109_s2 }
  0x17   :  { %p161_p8 = scmp.ne.s32.totalorder %s109_s2, %s160_s29  ;;  %p166_p10 = scmp.lt.s32.totalorder %s160_s29, %s160_s29 }
  0x18   :  { %33 = vadd.xlane.f32.xlu0 %v225_v2 }
  0x19   :  { %p167_p11 = por %p166_p10, %p165_p9 }
  0x1a   :  { %39 = vadd.xlane.f32.xlu1 %v36_v3 }
  0x1b   :  { %p168_p12 = pnand %p167_p11, %p161_p8 }
  0xa1   :  { %v32_v4 = vpop.xlane.xlu0 %31 }
  0xa2   :  { %v41_v5 = vmul.f32 0.0078125, %v32_v4 }
  0xa3   :  { %v38_v6 = vpop.xlane.xlu1 %37 }
  0xa4   :  { %v43_v7 = vmul.f32 %v41_v5, %v32_v4  ;;  %v71_v30 = vsub.f32 %v29_v0, %v41_v5 }
  0xa5   :  { %v34_v8 = vpop.xlane.xlu0 %33 }
  0xa6   :  { %v42_v9 = vmul.f32 0.0078125, %v34_v8  ;;  %v45_v10 = vsub.f32 %v38_v6, %v43_v7 }
  0xa7   :  { %v40_v11 = vpop.xlane.xlu1 %39 }
  0xa8   :  { %v44_v12 = vmul.f32 %v42_v9, %v34_v8  ;;  %v47_v13 = vmul.f32 0.007874016, %v45_v10  ;;  %v72_v36 = vsub.f32 %v225_v2, %v42_v9 }
  0xaa   :  { %v49_v14 = vmax.f32 %v47_v13, 0.0  ;;  %v46_v15 = vsub.f32 %v40_v11, %v44_v12 }
  0xac   :  { %126 = vrsqrt.f32 %v49_v14  ;;  %v48_v16 = vmul.f32 0.007874016, %v46_v15  ;;  %vm53_vm0 = vcmp.eq.f32.partialorder %v49_v14, inf  ;;  %v56_v20 = vand.u32 2147483648, %v49_v14 }
  0xad   :  { %vm55_vm1 = vcmp.eq.f32.partialorder %v49_v14, 0.0 }
  0xae   :  { %v50_v17 = vmax.f32 %v48_v16, 0.0 }
  0xb0   :  { %128 = vrsqrt.f32 %v50_v17  ;;  %vm60_vm2 = vcmp.eq.f32.partialorder %v50_v17, inf  ;;  %v63_v26 = vand.u32 2147483648, %v50_v17  ;;  %vm62_vm3 = vcmp.eq.f32.partialorder %v50_v17, 0.0 }
  0xb6   :  { %v127_v18 = vpop.eup %126 }
  0xb7   :  { %v52_v19 = vmul.f32 %v127_v18, %v49_v14 }
  0xb9   :  { %v54_v21 = vsel %vm53_vm0, %v49_v14, %v52_v19 }
  0xba   :  { %v57_v22 = vsel %vm55_vm1, %v56_v20, %v54_v21  ;;  %v129_v23 = vpop.eup %128 }
  0xbb   :  { %v65_v24 = vadd.f32 1e-05, %v57_v22  ;;  %v59_v25 = vmul.f32 %v129_v23, %v50_v17 }
  0xbd   :  { %130 = vrcp.f32 %v65_v24  ;;  %v61_v27 = vsel %vm60_vm2, %v50_v17, %v59_v25 }
  0xbe   :  { %v64_v28 = vsel %vm62_vm3, %v63_v26, %v61_v27 }
  0xbf   :  { %v66_v29 = vadd.f32 1e-05, %v64_v28 }
  0xc1   :  { %132 = vrcp.f32 %v66_v29 }
  0xc7   :  { %v131_v31 = vpop.eup %130 }
  0xc8   :  { %v73_v33 = vmul.f32 %v131_v31, %v71_v30 }
  0xca   :  { %v81_v35 = vmul.f32 %v120_v32, %v73_v33 }
  0xcb   :  { %v133_v37 = vpop.eup %132 }
  0xcc   :  { %v89_v38 = vadd.f32 %v121_v34, %v81_v35  ;;  %v74_v39 = vmul.f32 %v133_v37, %v72_v36 }
  0xce   :  { %v91_v40 = vmul.f32 0.5, %v89_v38  ;;  %v82_v41 = vmul.f32 %v120_v32, %v74_v39 }
  0xd0   :  { %134 = vtanh.f32 %v91_v40  ;;  %v90_v42 = vadd.f32 %v121_v34, %v82_v41 }
  0xd2   :  { %v92_v43 = vmul.f32 0.5, %v90_v42 }
  0xd4   :  { %136 = vtanh.f32 %v92_v43 }
  0xda   :  { %v135_v44 = vpop.eup %134 }
  0xdb   :  { %v95_v45 = vadd.f32 1.0, %v135_v44 }
  0xdd   :  { %v97_v46 = vmul.f32 0.5, %v95_v45 }
  0xde   :  { %v137_v47 = vpop.eup %136 }
  0xdf   :  { %v99_v48 = vmul.f32 %v97_v46, %v29_v0  ;;  %v96_v49 = vadd.f32 1.0, %v137_v47 }
  0xe1   :  { %101 = vst [vmem:[#allocation5] sm:$0xff] %v99_v48  ;;  %v98_v50 = vmul.f32 0.5, %v96_v49 }
  0xe3   :  { %v100_v51 = vmul.f32 %v98_v50, %v225_v2 }
  0xe5   :  { %102 = vst [vmem:[#allocation5 + $0x8] sm:$0xff] %v100_v51 }
  0xe6   :  { %171 = shalt.err (!%p168_p12)
}
  0xe7   :  { %s172_s5 = scalar_lea.hbm %s256_s3, 256 }
  0xe8   :  { %p173_p13 = scmp.ne.s32.totalorder %s256_s3, %s172_s5  ;;  %p176_p0 = scmp.lt.u32.totalorder %s172_s5, %s256_s3 }
  0xea   :  { %p178_p1 = pnand %p176_p0, %p173_p13 }
  0xec   :  { %181 = shalt.err (!%p178_p1)
}
  0xed   :  { %114 = dma.vmem_to_hbm [thread:$0]  %s109_s2, 256, %s256_s3, [#allocation4], %s187_s22, %s187_s22, %s188_s23  }
  0xee   :  { %184 = dma.done.wait [#allocation4], 256  }
  0xef   :  { %185 = vsyncadd [#allocation4], 4294967040 }
  0xf0   :  { %118 = vsyncpa [#allocation3], 1 }
  0xf1   :  { %119 = vsyncpa [#allocation4], 1 }

</bundles_post_ra>
